<compile_context>
chip_gen: v7x
topology: tpu7x:2x2x1
jax: 0.10.0
libtpu: 0.0.40
codegen_flags: <defaults>
</compile_context>

<pallas_src>
import jax
import jax.numpy as jnp
from jax.experimental import pallas as pl
from jax.experimental.pallas import tpu as pltpu


_LANES = 128          # vreg lane width (fast axis)
_MIN_TILE_ROWS = 8    # one f32 vreg sublane extent
_MAX_TILE_ROWS = 512  # 512 x 128 x 4B = 256 KiB per block (safe on v5e/v6e/v7x)


def _round_up(x, m):
    return (x + m - 1) // m * m


def _affine_kernel(wb_ref, x_ref, o_ref):
    # wb_ref is a tiny SMEM-resident array: wb_ref[0] = weight, wb_ref[1] = bias.
    w = wb_ref[0]
    b = wb_ref[1]
    o_ref[...] = x_ref[...] * w + b


def dummy_linear_forward(params, x):
    """y = x @ W.T + b with W: (1, 1), b: (1,); x[..., 1] -> y[..., 1]."""
    w, b = params["w"], params["b"]
    assert x.shape[-1] == 1, x.shape

    out_shape = x.shape
    flat = x.reshape(-1).astype(jnp.float32)
    n = flat.shape[0]

    # Lane-dense repack: (rows, 128) slab padded to whole row tiles.
    rows_needed = -(-n // _LANES)
    tile_rows = min(_MAX_TILE_ROWS, _round_up(rows_needed, _MIN_TILE_ROWS))
    rows = _round_up(rows_needed, tile_rows)
    n_pad = rows * _LANES
    xp = jnp.zeros((n_pad,), jnp.float32).at[:n].set(flat).reshape(rows, _LANES)

    # Scalar weight / bias packed into one SMEM array (no padded VMEM copies).
    wb = jnp.stack([w.reshape(()), b.reshape(())]).astype(jnp.float32)

    out = pl.pallas_call(
        _affine_kernel,
        out_shape=jax.ShapeDtypeStruct((rows, _LANES), jnp.float32),
        grid=(rows // tile_rows,),
        in_specs=[
            pl.BlockSpec(memory_space=pltpu.MemorySpace.SMEM),
            pl.BlockSpec((tile_rows, _LANES), lambda i: (i, 0)),
        ],
        out_specs=pl.BlockSpec((tile_rows, _LANES), lambda i: (i, 0)),
        # Alias the padded input slab with the output: elementwise in-place,
        # saves one HBM buffer / writeback stream.
        input_output_aliases={1: 0},
        compiler_params=pltpu.CompilerParams(
            dimension_semantics=("parallel",),
        ),
    )(wb, xp)

    return out.reshape(-1)[:n].reshape(out_shape)


def init_model_params(key):
    # nn.Linear(1, 1) default init: U(-1/sqrt(in), +1/sqrt(in)) with in=1 -> U(-1, 1).
    kw, kb = jax.random.split(key)
    w = jax.random.uniform(kw, (1, 1), jnp.float32, -1.0, 1.0)
    b = jax.random.uniform(kb, (1,), jnp.float32, -1.0, 1.0)
    return {"w": w, "b": b}


def dummy_model_forward(params, x):
    # dummy_layer = nn.Identity() is never applied in forward(); only the Linear runs.
    return dummy_linear_forward(params, x)


if __name__ == "__main__":
    key = jax.random.PRNGKey(0)
    pkey, xkey = jax.random.split(key)

    params = init_model_params(pkey)
    # Small shapes consistent with Linear(1, 1): batch=2, seq=8, features=1.
    x = jax.random.normal(xkey, (2, 8, 1), jnp.float32)

    out = dummy_model_forward(params, x)
    out = jax.block_until_ready(out)

    # Pure-JAX reference: Linear(1, 1) == scalar affine map.
    ref = x * params["w"][0, 0] + params["b"][0]

    assert out.shape == x.shape, out.shape
    assert bool(jnp.all(jnp.isfinite(out)))
    assert bool(jnp.allclose(out, ref, atol=1e-6, rtol=1e-6))
    print("KERNEL_OK")
</pallas_src>

<mosaic_0001>
module attributes {stable_mosaic.version = 11 : i64} {
  func.func @_affine_kernel(%arg0: i32, %arg1: memref<2xf32, #tpu.memory_space<smem>>, %arg2: memref<8x128xf32, #tpu.memory_space<vmem>>, %arg3: memref<8x128xf32, #tpu.memory_space<vmem>>) attributes {dimension_semantics = [#tpu.dimension_semantics<parallel>], iteration_bounds = array<i64: 1>, scalar_prefetch = 0 : i64, scratch_operands = 0 : i64, tpu.core_type = #tpu.core_type<tc>, window_params = [{transform_indices = @transform_0, window_bounds = array<i64: 2>}, {transform_indices = @transform_1, window_bounds = array<i64: 8, 128>}, {transform_indices = @transform_2, window_bounds = array<i64: 8, 128>}]} {
    %c0 = arith.constant 0 : index
    %0 = memref.load %arg1[%c0] : memref<2xf32, #tpu.memory_space<smem>>
    %c1 = arith.constant 1 : index
    %1 = memref.load %arg1[%c1] : memref<2xf32, #tpu.memory_space<smem>>
    %c0_0 = arith.constant 0 : index
    %c0_1 = arith.constant 0 : index
    %2 = vector.load %arg2[%c0_0, %c0_1] : memref<8x128xf32, #tpu.memory_space<vmem>>, vector<8x128xf32>
    %3 = vector.broadcast %0 : f32 to vector<8x128xf32>
    %4 = arith.mulf %2, %3 : vector<8x128xf32>
    %5 = vector.broadcast %1 : f32 to vector<8x128xf32>
    %6 = arith.addf %4, %5 : vector<8x128xf32>
    %c0_2 = arith.constant 0 : index
    %c0_3 = arith.constant 0 : index
    %7 = vector.load %arg3[%c0_2, %c0_3] : memref<8x128xf32, #tpu.memory_space<vmem>>, vector<8x128xf32>
    tpu.vector_store %arg3[%c0_2, %c0_3], %6 {strides = array<i32>} : memref<8x128xf32, #tpu.memory_space<vmem>>, vector<8x128xf32>,
    return
  }
  func.func @transform_0(%arg0: i32) -> i32 {
    %c0_i32 = arith.constant 0 : i32
    %c0_i32_0 = arith.constant 0 : i32
    return %c0_i32 : i32
  }
  func.func @transform_1(%arg0: i32) -> (i32, i32) {
    %c0_i32 = arith.constant 0 : i32
    %c0_i32_0 = arith.constant 0 : i32
    return %arg0, %c0_i32 : i32, i32
  }
  func.func @transform_2(%arg0: i32) -> (i32, i32) {
    %c0_i32 = arith.constant 0 : i32
    %c0_i32_0 = arith.constant 0 : i32
    return %arg0, %c0_i32 : i32, i32
  }
}

</mosaic_0001>

<bundles_post_ra>
// kernel: tpu_custom_call.1
= control target key start
LH: loop header
LB: loop body
LE: loop exit
PB: predicated region body
PF: predicated region fallthrough
CT: control target
= control target key end

     0   :  { %7 = vsyncpa [#allocation5], 0  ;;  %s172_s0 = inlined_call_operand.vmem [shape: f32[2], index: 0, kind: input, shape index: {}]   ;;  %s173_s1 = inlined_call_operand.hbm [shape: f32[8,128], index: 1, kind: input, shape index: {}, may-alias: {1,2}]   ;;  %s174_s2 = inlined_call_operand.hbm [shape: f32[8,128], index: 2, kind: output, shape index: {}, may-alias: {1,2}]  }
   0x1   :  { %8 = vsyncpa [#allocation3], 0 }
   0x2   :  { %9 = vsyncpa [#allocation4], 0  ;;  %s16_s11 = sshll.u32 %s172_s0, 4  ;;  %s17_s11 = int_to_ptr.vmem [resolvable:$true] %s16_s11 }
   0x3   :  { %s65_s12 = scalar_lea.vmem %s17_s11, 16  ;;  %p70_p1 = scmp.lt.s32.totalorder %s17_s11, %s17_s11 }
   0x4   :  { %p66_p0 = scmp.ne.s32.totalorder %s17_s11, %s65_s12  ;;  %p71_p2 = scmp.lt.s32.totalorder %s65_s12, %s65_s12 }
   0x6   :  { %p72_p3 = por %p71_p2, %p70_p1 }
   0x8   :  { %p73_p4 = pnand %p72_p3, %p66_p0 }
   0xa   :  { %76 = shalt.err (!%p73_p4)
}
   0xb   :  { %s127_s13 = smov [#allocation2]   ;;  %s128_s14 = smov [#allocation6]  }
   0xc   :  { %19 = dma.vmem_to_smem %s17_s11, 16, %s127_s13, [#allocation5]  }
   0xd   :  { %s26_s15 = sshll.u32 %s128_s14, 4  ;;  %s77_s18 = scalar_lea.hbm %s173_s1, 128  ;;  %s27_s15 = int_to_ptr.vmem [resolvable:$true] %s26_s15 }
   0xe   :  { %p78_p5 = scmp.ne.s32.totalorder %s173_s1, %s77_s18  ;;  %p81_p6 = scmp.lt.u32.totalorder %s77_s18, %s173_s1 }
  0x10   :  { %p83_p7 = pnand %p81_p6, %p78_p5 }
  0x12   :  { %86 = shalt.err (!%p83_p7)
}
  0x13   :  { %s87_s22 = scalar_lea.vmem %s27_s15, 128  ;;  %p92_p9 = scmp.lt.s32.totalorder %s27_s15, %s27_s15 }
  0x14   :  { %p88_p8 = scmp.ne.s32.totalorder %s27_s15, %s87_s22  ;;  %p93_p10 = scmp.lt.s32.totalorder %s87_s22, %s87_s22 }
  0x16   :  { %p94_p11 = por %p93_p10, %p92_p9 }
  0x18   :  { %p95_p12 = pnand %p94_p11, %p88_p8 }
  0x1a   :  { %98 = shalt.err (!%p95_p12)
}
  0x1b   :  { %29 = dma.hbm_to_vmem [thread:$0]  %s173_s1, 128, %s27_s15, [#allocation3]  }
  0x1c   :  { %121 = dma.done.wait [#allocation5], 16  }
  0x1d   :  { %122 = vsyncadd [#allocation5], 4294967280 }
  0x1e   :  { %123 = dma.done.wait [#allocation3], 128  }
  0x1f   :  { %124 = vsyncadd [#allocation3], 4294967168 }
  0x20   :  { %36 = sfence }
  0x21   :  { %s37_s25 = sld [smem:[#allocation2]]  ;;  %s61_s26 = sld [smem:[#allocation2 + $0x1]]  ;;  %v39_v0 = vld [vmem:[#allocation6] sm:$0xff] }
  0x22   :  { %s129_s27 = smov [#allocation7]  }
  0x23   :  { %s51_s28 = sshll.u32 %s129_s27, 4  ;;  %s52_s28 = int_to_ptr.vmem [resolvable:$true] %s51_s28 }
  0x24   :  { %s99_s29 = scalar_lea.vmem %s52_s28, 128  ;;  %p104_p0 = scmp.lt.s32.totalorder %s52_s28, %s52_s28 }
  0x25   :  { %p100_p13 = scmp.ne.s32.totalorder %s52_s28, %s99_s29  ;;  %p105_p1 = scmp.lt.s32.totalorder %s99_s29, %s99_s29 }
  0x27   :  { %v40_v1 = vstv %s37_s25  ;;  %v42_v2 = vstv %s61_s26  ;;  %p106_p2 = por %p105_p1, %p104_p0 }
  0x28   :  { %v41_v3 = vmul.f32 %v40_v1, %v39_v0 }
  0x29   :  { %p107_p3 = pnand %p106_p2, %p100_p13 }
  0x2a   :  { %v43_v4 = vadd.f32 %v42_v2, %v41_v3 }
  0x2c   :  { %44 = vst [vmem:[#allocation7] sm:$0xff] %v43_v4 }
  0x2d   :  { %110 = shalt.err (!%p107_p3)
}
  0x2e   :  { %s111_s3 = scalar_lea.hbm %s174_s2, 128 }
  0x2f   :  { %p112_p4 = scmp.ne.s32.totalorder %s174_s2, %s111_s3  ;;  %p115_p5 = scmp.lt.u32.totalorder %s111_s3, %s174_s2 }
  0x31   :  { %p117_p6 = pnand %p115_p5, %p112_p4 }
  0x33   :  { %120 = shalt.err (!%p117_p6)
}
  0x34   :  { %54 = dma.vmem_to_hbm [thread:$0]  %s52_s28, 128, %s174_s2, [#allocation4]  }
  0x35   :  { %125 = dma.done.wait [#allocation4], 128  }
  0x36   :  { %126 = vsyncadd [#allocation4], 4294967168 }
  0x37   :  { %58 = vsyncpa [#allocation3], 1 }
  0x38   :  { %59 = vsyncpa [#allocation4], 1 }
  0x39   :  { %60 = vsyncpa [#allocation5], 1 }

</bundles_post_ra>
